<compile_context>
chip_gen: v6e
topology: v6e:2x2x1
jax: 0.10.0
libtpu: 0.0.40
codegen_flags: <defaults>
</compile_context>

<pallas_src>
import jax
import jax.numpy as jnp
import numpy as np
from jax.experimental import pallas as pl
from jax.experimental.pallas import tpu as pltpu

BN_EPS = 1e-5
SUBLANE = 8
LANE = 128


def _round_up(x, m):
    return ((x + m - 1) // m) * m


# --------------------------------- kernel ---------------------------------
def _make_dense_block_kernel(layer_meta, C_in_pad, L, K, n_lanes, compute_dtype):
    half = K // 2

    def kernel(*refs):
        x_ref = refs[0]
        o_ref = refs[-1]
        param_refs = refs[1:-1]

        # Dense prefix: the (channel-padded) raw input is the first slab
        # segment, exactly as torch.cat([x, out], dim=1) accumulates.
        o_ref[:C_in_pad, :] = x_ref[...]

        # Within-batch lane index (batch elements are folded onto lanes in
        # contiguous runs of L); hoisted out of all loops.
        lane = jax.lax.broadcasted_iota(jnp.int32, (1, n_lanes), 1)
        lane_local = lane % L

        ridx = 0
        for meta in layer_meta:
            seg_in = meta["seg_in"]      # 8-aligned #rows of this layer's input prefix
            row0 = meta["row0"]          # slab row where this layer's segment starts
            grow_pad = meta["grow_pad"]
            dil = meta["dilation"]

            w_ref = param_refs[ridx]
            ridx += 1
            if meta["use_bn_relu"]:
                scale_ref = param_refs[ridx]
                shift_ref = param_refs[ridx + 1]
                ridx += 2

            act = o_ref[:seg_in, :]
            if meta["use_bn_relu"]:
                # Inference BatchNorm1d (folded affine) + ReLU in f32 on the VPU.
                a32 = act.astype(jnp.float32)
                a32 = jnp.maximum(a32 * scale_ref[...] + shift_ref[...], 0.0)
                act = a32.astype(compute_dtype)

            # K dilated taps -> K small MXU matmuls accumulated in f32; only one
            # shifted copy of the prefix is live at a time.
            acc = None
            for k in range(K):
                off = (k - half) * dil           # static per tap / layer
                if off == 0:
                    tap = act
                else:
                    # Roll the whole lane-folded slab; positions whose window
                    # falls outside this batch element's 'same' padding are
                    # zeroed by the lane mask (also kills cross-batch and
                    # global wrap-around).
                    rolled = jnp.roll(act, -off, axis=1)
                    if off > 0:
                        mask = lane_local < (L - off)
                    else:
                        mask = lane_local >= (-off)
                    tap = jnp.where(mask, rolled, jnp.zeros_like(rolled))
                part = jnp.dot(w_ref[k], tap, preferred_element_type=jnp.float32)
                acc = part if acc is None else acc + part

            # Full 8-aligned segment store (padding rows are exact zeros since
            # their weight rows are zero).
            o_ref[row0:row0 + grow_pad, :] = acc.astype(o_ref.dtype)

    return kernel


# --------------------------------- wrapper ---------------------------------
def _choose_batch_block(B, L, C_in_pad, C_total_pad, itemsize, budget_bytes):
    """Largest divisor of B whose double-buffered blocks fit the VMEM budget,
    keeping >= 2 grid steps when possible (v7x megacore sharding)."""
    def fits(bb):
        nl = bb * L
        need = 2 * (C_in_pad + C_total_pad) * nl * itemsize   # double-buffered I/O
        need += 6 * C_total_pad * nl * 4                      # f32 in-kernel temporaries
        return need <= budget_bytes

    divisors = [d for d in range(1, B + 1) if B % d == 0]
    candidates = [d for d in divisors
                  if fits(d) and ((d * L) % LANE == 0 or d == B)]
    if not candidates:
        return 1
    best = max(candidates)
    multi_step = [d for d in candidates if B // d >= 2]
    if multi_step and B >= 2:
        best = max(multi_step)
    return best


def dense_block_pallas(x, params, layout, *, batch_block=None,
                       vmem_block_budget_bytes=24 << 20):
    """Fused DenseBlock forward: one pallas_call for all layers.

    x: (B, C_in, L).  Returns (B, C_in + n_layers*growth, L) in the compute
    dtype chosen at init (bf16 by default).
    """
    B, C_in, L = x.shape
    assert C_in == layout["C_in"]
    K = layout["K"]
    cdt = layout["compute_dtype"]
    C_in_pad = layout["C_in_pad"]
    C_total_pad = layout["C_total_pad"]
    itemsize = np.dtype(cdt).itemsize

    if batch_block is None:
        batch_block = _choose_batch_block(B, L, C_in_pad, C_total_pad, itemsize,
                                          vmem_block_budget_bytes)
    assert B % batch_block == 0, "batch must be divisible by batch_block"
    n_lanes = batch_block * L
    assert n_lanes % LANE == 0 or batch_block == B, \
        "batch_block*L must be a multiple of 128 (pad L)"
    # TODO(synk): tile L with a cumulative-receptive-field halo for very long L.

    # Layout plumbing (outside the kernel): NCL -> lane-folded (C_pad, B*L).
    x_p = jnp.pad(x.astype(cdt), ((0, 0), (0, C_in_pad - C_in), (0, 0)))
    x_fold = jnp.transpose(x_p, (1, 0, 2)).reshape(C_in_pad, B * L)

    layer_meta = []
    flat_args = []
    in_specs = [pl.BlockSpec((C_in_pad, n_lanes), lambda b: (0, b))]
    for p in params:
        layer_meta.append(dict(seg_in=p["seg_in"], row0=p["row0"],
                               grow_pad=p["grow_pad"], dilation=p["dilation"],
                               use_bn_relu=p["use_bn_relu"]))
        flat_args.append(p["w_slab"])
        in_specs.append(pl.BlockSpec(p["w_slab"].shape, lambda b: (0, 0, 0)))
        if p["use_bn_relu"]:
            flat_args += [p["scale"], p["shift"]]
            in_specs.append(pl.BlockSpec(p["scale"].shape, lambda b: (0, 0)))
            in_specs.append(pl.BlockSpec(p["shift"].shape, lambda b: (0, 0)))

    kernel = _make_dense_block_kernel(layer_meta, C_in_pad, L, K, n_lanes, cdt)

    # Explicit VMEM budget: double-buffered I/O blocks + weights + f32 temps,
    # ~30% headroom, capped well under v7x's 64 MiB physical VMEM.
    block_bytes = 2 * (C_in_pad + C_total_pad) * n_lanes * itemsize
    weight_bytes = sum(int(np.prod(a.shape)) * np.dtype(a.dtype).itemsize
                       for a in flat_args)
    temp_bytes = 6 * C_total_pad * n_lanes * 4
    vmem_limit = int(min(max((block_bytes + 2 * weight_bytes + temp_bytes) * 1.3,
                             8 << 20), 48 << 20))

    flops = 0
    c = C_in
    for p in params:
        flops += 2 * p["growth"] * c * K * B * L
        c += p["growth"]
    bytes_accessed = int(x_fold.size * itemsize
                         + C_total_pad * B * L * itemsize + weight_bytes)

    out_fold = pl.pallas_call(
        kernel,
        out_shape=jax.ShapeDtypeStruct((C_total_pad, B * L), cdt),
        grid_spec=pl.GridSpec(
            grid=(B // batch_block,),
            in_specs=in_specs,
            out_specs=pl.BlockSpec((C_total_pad, n_lanes), lambda b: (0, b)),
        ),
        compiler_params=pltpu.CompilerParams(
            dimension_semantics=("parallel",),
            vmem_limit_bytes=vmem_limit),
        cost_estimate=pl.CostEstimate(flops=int(flops), transcendentals=0,
                                      bytes_accessed=bytes_accessed),
    )(x_fold, *flat_args)

    # Unfold lanes back to (B, C, L) and strip the channel padding.
    out = out_fold.reshape(C_total_pad, B, L).transpose(1, 0, 2)
    return jnp.take(out, jnp.asarray(layout["real_rows"]), axis=1)


# ------------------------------ parameter init ------------------------------
def init_dense_block_params(key, n_layers, input_channels, growth_rate,
                            max_dilation=64, kernel_size=3,
                            skip_bn_relu_first_layer=True,
                            compute_dtype=jnp.bfloat16):
    """Deterministic params mirroring DenseBlock.__init__, laid out for the
    8-sublane-aligned slab (BatchNorm folded to inference scale/shift)."""
    dilation_exp_mod = int(np.log2(max_dilation)) + 1
    K = kernel_size
    C_in = input_channels
    C_in_pad = _round_up(C_in, SUBLANE)
    grow_pad = _round_up(growth_rate, SUBLANE)

    slab_rows = list(range(C_in))       # slab row of every logical channel so far
    params = []
    c_in = C_in
    for i in range(n_layers):
        key, kw, kg, kb, km, kv = jax.random.split(key, 6)
        dilation = 2 ** (i % dilation_exp_mod)
        use_bn_relu = not (i == 0 and skip_bn_relu_first_layer)
        seg_in = C_in_pad + i * grow_pad    # padded rows of this layer's input prefix
        row0 = seg_in                       # this layer's output segment start

        # torch Conv1d weight is (out, in, K); keep as (K, out, in) for the ref.
        w = 0.1 * jax.random.normal(kw, (K, growth_rate, c_in), jnp.float32)
        gamma = 1.0 + 0.1 * jax.random.normal(kg, (c_in,), jnp.float32)
        beta = 0.1 * jax.random.normal(kb, (c_in,), jnp.float32)
        running_mean = 0.1 * jax.random.normal(km, (c_in,), jnp.float32)
        running_var = 1.0 + 0.5 * jax.random.uniform(kv, (c_in,), jnp.float32)
        scale_l = np.asarray(gamma) / np.sqrt(np.asarray(running_var) + BN_EPS)
        shift_l = np.asarray(beta) - np.asarray(running_mean) * scale_l

        rows = np.asarray(slab_rows, dtype=np.int64)        # logical -> slab row
        # (K, grow_pad, seg_in) weights in the padded slab layout (zero rows /
        # columns on padding positions), pre-cast to the compute dtype.
        w_slab = np.zeros((K, grow_pad, seg_in), np.float32)
        w_slab[:, :growth_rate, rows] = np.asarray(w)
        # Zero-padded BN affine per padded-prefix row (padding rows stay zero).
        scale_pad = np.zeros((seg_in, 1), np.float32)
        shift_pad = np.zeros((seg_in, 1), np.float32)
        scale_pad[rows, 0] = scale_l
        shift_pad[rows, 0] = shift_l

        params.append(dict(
            w=w,                                               # pure-JAX reference
            scale_logical=jnp.asarray(scale_l.reshape(c_in, 1)),
            shift_logical=jnp.asarray(shift_l.reshape(c_in, 1)),
            w_slab=jnp.asarray(w_slab).astype(compute_dtype),
            scale=jnp.asarray(scale_pad),
            shift=jnp.asarray(shift_pad),
            dilation=dilation, use_bn_relu=use_bn_relu,
            growth=growth_rate, seg_in=seg_in, row0=row0, grow_pad=grow_pad))

        slab_rows += list(range(row0, row0 + growth_rate))
        c_in += growth_rate

    layout = dict(C_in=C_in, C_in_pad=C_in_pad, grow_pad=grow_pad,
                  C_total_pad=C_in_pad + n_layers * grow_pad,
                  real_rows=np.asarray(slab_rows, dtype=np.int32),
                  K=K, compute_dtype=compute_dtype)
    return params, layout


# ----------------------- pure-JAX reference for checking -----------------------
def _conv1d_same_ref(x, w, dilation):
    # x: (B, C, L), w: (K, G, C), 'same' padding, no bias
    K = w.shape[0]
    half = K // 2
    pad = half * dilation
    xp = jnp.pad(x, ((0, 0), (0, 0), (pad, pad)))
    L = x.shape[2]
    out = jnp.zeros((x.shape[0], w.shape[1], L), jnp.float32)
    for k in range(K):
        start = k * dilation
        out = out + jnp.einsum("gc,bcl->bgl", w[k], xp[:, :, start:start + L])
    return out


def dense_block_reference(x, params):
    for p in params:
        act = x.astype(jnp.float32)
        if p["use_bn_relu"]:
            act = act * p["scale_logical"][None] + p["shift_logical"][None]
            act = jnp.maximum(act, 0.0)
        out = _conv1d_same_ref(act, p["w"], p["dilation"])
        x = jnp.concatenate([x, out.astype(x.dtype)], axis=1)
    return x


if __name__ == "__main__":
    key = jax.random.PRNGKey(0)
    key, kx = jax.random.split(key)

    # DenseBlock(n_layers=3, input_channels=4, growth_rate=4, max_dilation=4)
    n_layers, input_channels, growth_rate = 3, 4, 4
    B, L = 2, 128
    x = jax.random.normal(kx, (B, input_channels, L), jnp.float32)
    C_total = input_channels + n_layers * growth_rate

    # Exact-check path (f32 end to end).
    params32, layout32 = init_dense_block_params(
        key, n_layers, input_channels, growth_rate, max_dilation=4,
        kernel_size=3, compute_dtype=jnp.float32)
    fwd32 = jax.jit(lambda xx: dense_block_pallas(xx, params32, layout32))
    y32 = jax.block_until_ready(fwd32(x))
    y_ref = dense_block_reference(x, params32)
    assert y32.shape == (B, C_total, L), y32.shape
    np.testing.assert_allclose(np.asarray(y32), np.asarray(y_ref),
                               rtol=1e-4, atol=1e-4)

    # Default fast path (bf16 slab / weights, f32 BN + MXU accumulation).
    params_bf, layout_bf = init_dense_block_params(
        key, n_layers, input_channels, growth_rate, max_dilation=4,
        kernel_size=3)  # compute_dtype=jnp.bfloat16 default
    fwd_bf = jax.jit(lambda xx: dense_block_pallas(xx, params_bf, layout_bf))
    y_bf = jax.block_until_ready(fwd_bf(x))
    assert y_bf.shape == (B, C_total, L), y_bf.shape
    np.testing.assert_allclose(np.asarray(y_bf.astype(jnp.float32)),
                               np.asarray(y_ref), rtol=1e-1, atol=1e-1)

    print("KERNEL_OK")
</pallas_src>

<mosaic_0001>
module attributes {stable_mosaic.version = 11 : i64} {
  func.func @kernel(%arg0: i32, %arg1: memref<8x128xf32, #tpu.memory_space<vmem>>, %arg2: memref<3x8x8xf32, #tpu.memory_space<vmem>>, %arg3: memref<3x8x16xf32, #tpu.memory_space<vmem>>, %arg4: memref<16x1xf32, #tpu.memory_space<vmem>>, %arg5: memref<16x1xf32, #tpu.memory_space<vmem>>, %arg6: memref<3x8x24xf32, #tpu.memory_space<vmem>>, %arg7: memref<24x1xf32, #tpu.memory_space<vmem>>, %arg8: memref<24x1xf32, #tpu.memory_space<vmem>>, %arg9: memref<32x128xf32, #tpu.memory_space<vmem>>) attributes {dimension_semantics = [#tpu.dimension_semantics<parallel>], iteration_bounds = array<i64: 2>, scalar_prefetch = 0 : i64, scratch_operands = 0 : i64, tpu.core_type = #tpu.core_type<tc>, window_params = [{transform_indices = @transform_0, window_bounds = array<i64: 8, 128>}, {pipeline_mode = #tpu.pipeline_mode<synchronous>, transform_indices = @transform_1, window_bounds = array<i64: 3, 8, 8>}, {pipeline_mode = #tpu.pipeline_mode<synchronous>, transform_indices = @transform_2, window_bounds = array<i64: 3, 8, 16>}, {pipeline_mode = #tpu.pipeline_mode<synchronous>, transform_indices = @transform_3, window_bounds = array<i64: 16, 1>}, {pipeline_mode = #tpu.pipeline_mode<synchronous>, transform_indices = @transform_4, window_bounds = array<i64: 16, 1>}, {pipeline_mode = #tpu.pipeline_mode<synchronous>, transform_indices = @transform_5, window_bounds = array<i64: 3, 8, 24>}, {pipeline_mode = #tpu.pipeline_mode<synchronous>, transform_indices = @transform_6, window_bounds = array<i64: 24, 1>}, {pipeline_mode = #tpu.pipeline_mode<synchronous>, transform_indices = @transform_7, window_bounds = array<i64: 24, 1>}, {transform_indices = @transform_8, window_bounds = array<i64: 32, 128>}]} {
    %c0 = arith.constant 0 : index
    %c0_0 = arith.constant 0 : index
    %0 = vector.load %arg1[%c0, %c0_0] : memref<8x128xf32, #tpu.memory_space<vmem>>, vector<8x128xf32>
    %c0_1 = arith.constant 0 : index
    %c0_2 = arith.constant 0 : index
    %1 = vector.load %arg9[%c0_1, %c0_2] : memref<32x128xf32, #tpu.memory_space<vmem>>, vector<8x128xf32>
    tpu.vector_store %arg9[%c0_1, %c0_2], %0 {strides = array<i32>} : memref<32x128xf32, #tpu.memory_space<vmem>>, vector<8x128xf32>,
    %2 = tpu.iota {dimensions = array<i32: 1>} : vector<1x128xi32>
    %c128_i32 = arith.constant 128 : i32
    %c0_i32 = arith.constant 0 : i32
    %3 = arith.cmpi eq, %c128_i32, %c0_i32 : i32
    %c1_i32 = arith.constant 1 : i32
    %4 = arith.select %3, %c1_i32, %c128_i32 : i32
    %5 = vector.broadcast %4 : i32 to vector<1x128xi32>
    %6 = arith.remsi %2, %5 : vector<1x128xi32>
    %c0_i32_3 = arith.constant 0 : i32
    %7 = vector.broadcast %c0_i32_3 : i32 to vector<1x128xi32>
    %8 = arith.cmpi ne, %6, %7 : vector<1x128xi32>
    %c0_i32_4 = arith.constant 0 : i32
    %9 = vector.broadcast %c0_i32_4 : i32 to vector<1x128xi32>
    %10 = arith.cmpi slt, %6, %9 : vector<1x128xi32>
    %c0_i32_5 = arith.constant 0 : i32
    %11 = arith.cmpi slt, %4, %c0_i32_5 : i32
    %12 = vector.broadcast %11 : i1 to vector<1x128xi1>
    %13 = vector.broadcast %12 : vector<1x128xi1> to vector<1x128xi1>
    %14 = arith.xori %10, %13 : vector<1x128xi1>
    %15 = arith.andi %14, %8 : vector<1x128xi1>
    %16 = vector.broadcast %4 : i32 to vector<1x128xi32>
    %17 = arith.addi %6, %16 : vector<1x128xi32>
    %18 = arith.select %15, %17, %6 : vector<1x128xi1>, vector<1x128xi32>
    %c0_6 = arith.constant 0 : index
    %c0_7 = arith.constant 0 : index
    %19 = vector.load %arg9[%c0_6, %c0_7] : memref<32x128xf32, #tpu.memory_space<vmem>>, vector<8x128xf32>
    %20 = vector.extract_strided_slice %19 {offsets = [0, 127], sizes = [8, 1], strides = [1, 1]} : vector<8x128xf32> to vector<8x1xf32>
    %21 = vector.extract_strided_slice %19 {offsets = [0, 0], sizes = [8, 127], strides = [1, 1]} : vector<8x128xf32> to vector<8x127xf32>
    %22 = tpu.concatenate %20, %21 in 1 : vector<8x1xf32>, vector<8x127xf32> -> vector<8x128xf32>
    %c1_i32_8 = arith.constant 1 : i32
    %23 = vector.broadcast %c1_i32_8 : i32 to vector<1x128xi32>
    %24 = arith.cmpi sge, %18, %23 : vector<1x128xi32>
    %cst = arith.constant 0.000000e+00 : f32
    %25 = vector.broadcast %cst : f32 to vector<8x128xf32>
    %26 = vector.shape_cast %24 : vector<1x128xi1> to vector<1x128xi1>
    %27 = vector.broadcast %26 : vector<1x128xi1> to vector<8x128xi1>
    %28 = arith.select %27, %22, %25 : vector<8x128xi1>, vector<8x128xf32>
    %c0_9 = arith.constant 0 : index
    %c0_10 = arith.constant 0 : index
    %c0_11 = arith.constant 0 : index
    %29 = vector.load %arg2[%c0_9, %c0_10, %c0_11] : memref<3x8x8xf32, #tpu.memory_space<vmem>>, vector<1x8x8xf32>
    %30 = vector.shape_cast %29 : vector<1x8x8xf32> to vector<8x8xf32>
    %cst_12 = arith.constant dense<0.000000e+00> : vector<8x128xf32>
    %31 = tpu.matmul %30, %28, %cst_12 {dimension_numbers = #tpu.dot_dimension_numbers<[1], [0], [0], [1], [0, 0, 1, 1], [], []>} : vector<8x8xf32>, vector<8x128xf32>, vector<8x128xf32> -> vector<8x128xf32>
    %c1 = arith.constant 1 : index
    %c0_13 = arith.constant 0 : index
    %c0_14 = arith.constant 0 : index
    %32 = vector.load %arg2[%c1, %c0_13, %c0_14] : memref<3x8x8xf32, #tpu.memory_space<vmem>>, vector<1x8x8xf32>
    %33 = vector.shape_cast %32 : vector<1x8x8xf32> to vector<8x8xf32>
    %cst_15 = arith.constant dense<0.000000e+00> : vector<8x128xf32>
    %34 = tpu.matmul %33, %19, %cst_15 {dimension_numbers = #tpu.dot_dimension_numbers<[1], [0], [0], [1], [0, 0, 1, 1], [], []>} : vector<8x8xf32>, vector<8x128xf32>, vector<8x128xf32> -> vector<8x128xf32>
    %35 = arith.addf %31, %34 : vector<8x128xf32>
    %36 = vector.extract_strided_slice %19 {offsets = [0, 1], sizes = [8, 127], strides = [1, 1]} : vector<8x128xf32> to vector<8x127xf32>
    %37 = vector.extract_strided_slice %19 {offsets = [0, 0], sizes = [8, 1], strides = [1, 1]} : vector<8x128xf32> to vector<8x1xf32>
    %38 = tpu.concatenate %36, %37 in 1 : vector<8x127xf32>, vector<8x1xf32> -> vector<8x128xf32>
    %c127_i32 = arith.constant 127 : i32
    %39 = vector.broadcast %c127_i32 : i32 to vector<1x128xi32>
    %40 = arith.cmpi slt, %18, %39 : vector<1x128xi32>
    %cst_16 = arith.constant 0.000000e+00 : f32
    %41 = vector.broadcast %cst_16 : f32 to vector<8x128xf32>
    %42 = vector.shape_cast %40 : vector<1x128xi1> to vector<1x128xi1>
    %43 = vector.broadcast %42 : vector<1x128xi1> to vector<8x128xi1>
    %44 = arith.select %43, %38, %41 : vector<8x128xi1>, vector<8x128xf32>
    %c2 = arith.constant 2 : index
    %c0_17 = arith.constant 0 : index
    %c0_18 = arith.constant 0 : index
    %45 = vector.load %arg2[%c2, %c0_17, %c0_18] : memref<3x8x8xf32, #tpu.memory_space<vmem>>, vector<1x8x8xf32>
    %46 = vector.shape_cast %45 : vector<1x8x8xf32> to vector<8x8xf32>
    %cst_19 = arith.constant dense<0.000000e+00> : vector<8x128xf32>
    %47 = tpu.matmul %46, %44, %cst_19 {dimension_numbers = #tpu.dot_dimension_numbers<[1], [0], [0], [1], [0, 0, 1, 1], [], []>} : vector<8x8xf32>, vector<8x128xf32>, vector<8x128xf32> -> vector<8x128xf32>
    %48 = arith.addf %35, %47 : vector<8x128xf32>
    %c8 = arith.constant 8 : index
    %c0_20 = arith.constant 0 : index
    %49 = vector.load %arg9[%c8, %c0_20] : memref<32x128xf32, #tpu.memory_space<vmem>>, vector<8x128xf32>
    tpu.vector_store %arg9[%c8, %c0_20], %48 {strides = array<i32>} : memref<32x128xf32, #tpu.memory_space<vmem>>, vector<8x128xf32>,
    %c0_21 = arith.constant 0 : index
    %c0_22 = arith.constant 0 : index
    %50 = vector.load %arg9[%c0_21, %c0_22] : memref<32x128xf32, #tpu.memory_space<vmem>>, vector<16x128xf32>
    %c0_23 = arith.constant 0 : index
    %c0_24 = arith.constant 0 : index
    %51 = vector.load %arg4[%c0_23, %c0_24] : memref<16x1xf32, #tpu.memory_space<vmem>>, vector<16x1xf32>
    %52 = vector.broadcast %51 : vector<16x1xf32> to vector<16x128xf32>
    %53 = arith.mulf %50, %52 : vector<16x128xf32>
    %c0_25 = arith.constant 0 : index
    %c0_26 = arith.constant 0 : index
    %54 = vector.load %arg5[%c0_25, %c0_26] : memref<16x1xf32, #tpu.memory_space<vmem>>, vector<16x1xf32>
    %55 = vector.broadcast %54 : vector<16x1xf32> to vector<16x128xf32>
    %56 = arith.addf %53, %55 : vector<16x128xf32>
    %cst_27 = arith.constant 0.000000e+00 : f32
    %57 = vector.broadcast %cst_27 : f32 to vector<16x128xf32>
    %58 = arith.maximumf %56, %57 : vector<16x128xf32>
    %59 = vector.extract_strided_slice %58 {offsets = [0, 126], sizes = [16, 2], strides = [1, 1]} : vector<16x128xf32> to vector<16x2xf32>
    %60 = vector.extract_strided_slice %58 {offsets = [0, 0], sizes = [16, 126], strides = [1, 1]} : vector<16x128xf32> to vector<16x126xf32>
    %61 = tpu.concatenate %59, %60 in 1 : vector<16x2xf32>, vector<16x126xf32> -> vector<16x128xf32>
    %c2_i32 = arith.constant 2 : i32
    %62 = vector.broadcast %c2_i32 : i32 to vector<1x128xi32>
    %63 = arith.cmpi sge, %18, %62 : vector<1x128xi32>
    %cst_28 = arith.constant 0.000000e+00 : f32
    %64 = vector.broadcast %cst_28 : f32 to vector<16x128xf32>
    %65 = vector.shape_cast %63 : vector<1x128xi1> to vector<1x128xi1>
    %66 = vector.broadcast %65 : vector<1x128xi1> to vector<16x128xi1>
    %67 = arith.select %66, %61, %64 : vector<16x128xi1>, vector<16x128xf32>
    %c0_29 = arith.constant 0 : index
    %c0_30 = arith.constant 0 : index
    %c0_31 = arith.constant 0 : index
    %68 = vector.load %arg3[%c0_29, %c0_30, %c0_31] : memref<3x8x16xf32, #tpu.memory_space<vmem>>, vector<1x8x16xf32>
    %69 = vector.shape_cast %68 : vector<1x8x16xf32> to vector<8x16xf32>
    %cst_32 = arith.constant dense<0.000000e+00> : vector<8x128xf32>
    %70 = tpu.matmul %69, %67, %cst_32 {dimension_numbers = #tpu.dot_dimension_numbers<[1], [0], [0], [1], [0, 0, 1, 1], [], []>} : vector<8x16xf32>, vector<16x128xf32>, vector<8x128xf32> -> vector<8x128xf32>
    %c1_33 = arith.constant 1 : index
    %c0_34 = arith.constant 0 : index
    %c0_35 = arith.constant 0 : index
    %71 = vector.load %arg3[%c1_33, %c0_34, %c0_35] : memref<3x8x16xf32, #tpu.memory_space<vmem>>, vector<1x8x16xf32>
    %72 = vector.shape_cast %71 : vector<1x8x16xf32> to vector<8x16xf32>
    %cst_36 = arith.constant dense<0.000000e+00> : vector<8x128xf32>
    %73 = tpu.matmul %72, %58, %cst_36 {dimension_numbers = #tpu.dot_dimension_numbers<[1], [0], [0], [1], [0, 0, 1, 1], [], []>} : vector<8x16xf32>, vector<16x128xf32>, vector<8x128xf32> -> vector<8x128xf32>
    %74 = arith.addf %70, %73 : vector<8x128xf32>
    %75 = vector.extract_strided_slice %58 {offsets = [0, 2], sizes = [16, 126], strides = [1, 1]} : vector<16x128xf32> to vector<16x126xf32>
    %76 = vector.extract_strided_slice %58 {offsets = [0, 0], sizes = [16, 2], strides = [1, 1]} : vector<16x128xf32> to vector<16x2xf32>
    %77 = tpu.concatenate %75, %76 in 1 : vector<16x126xf32>, vector<16x2xf32> -> vector<16x128xf32>
    %c126_i32 = arith.constant 126 : i32
    %78 = vector.broadcast %c126_i32 : i32 to vector<1x128xi32>
    %79 = arith.cmpi slt, %18, %78 : vector<1x128xi32>
    %cst_37 = arith.constant 0.000000e+00 : f32
    %80 = vector.broadcast %cst_37 : f32 to vector<16x128xf32>
    %81 = vector.shape_cast %79 : vector<1x128xi1> to vector<1x128xi1>
    %82 = vector.broadcast %81 : vector<1x128xi1> to vector<16x128xi1>
    %83 = arith.select %82, %77, %80 : vector<16x128xi1>, vector<16x128xf32>
    %c2_38 = arith.constant 2 : index
    %c0_39 = arith.constant 0 : index
    %c0_40 = arith.constant 0 : index
    %84 = vector.load %arg3[%c2_38, %c0_39, %c0_40] : memref<3x8x16xf32, #tpu.memory_space<vmem>>, vector<1x8x16xf32>
    %85 = vector.shape_cast %84 : vector<1x8x16xf32> to vector<8x16xf32>
    %cst_41 = arith.constant dense<0.000000e+00> : vector<8x128xf32>
    %86 = tpu.matmul %85, %83, %cst_41 {dimension_numbers = #tpu.dot_dimension_numbers<[1], [0], [0], [1], [0, 0, 1, 1], [], []>} : vector<8x16xf32>, vector<16x128xf32>, vector<8x128xf32> -> vector<8x128xf32>
    %87 = arith.addf %74, %86 : vector<8x128xf32>
    %c16 = arith.constant 16 : index
    %c0_42 = arith.constant 0 : index
    %88 = vector.load %arg9[%c16, %c0_42] : memref<32x128xf32, #tpu.memory_space<vmem>>, vector<8x128xf32>
    tpu.vector_store %arg9[%c16, %c0_42], %87 {strides = array<i32>} : memref<32x128xf32, #tpu.memory_space<vmem>>, vector<8x128xf32>,
    %c0_43 = arith.constant 0 : index
    %c0_44 = arith.constant 0 : index
    %89 = vector.load %arg9[%c0_43, %c0_44] : memref<32x128xf32, #tpu.memory_space<vmem>>, vector<24x128xf32>
    %c0_45 = arith.constant 0 : index
    %c0_46 = arith.constant 0 : index
    %90 = vector.load %arg7[%c0_45, %c0_46] : memref<24x1xf32, #tpu.memory_space<vmem>>, vector<24x1xf32>
    %91 = vector.broadcast %90 : vector<24x1xf32> to vector<24x128xf32>
    %92 = arith.mulf %89, %91 : vector<24x128xf32>
    %c0_47 = arith.constant 0 : index
    %c0_48 = arith.constant 0 : index
    %93 = vector.load %arg8[%c0_47, %c0_48] : memref<24x1xf32, #tpu.memory_space<vmem>>, vector<24x1xf32>
    %94 = vector.broadcast %93 : vector<24x1xf32> to vector<24x128xf32>
    %95 = arith.addf %92, %94 : vector<24x128xf32>
    %cst_49 = arith.constant 0.000000e+00 : f32
    %96 = vector.broadcast %cst_49 : f32 to vector<24x128xf32>
    %97 = arith.maximumf %95, %96 : vector<24x128xf32>
    %98 = vector.extract_strided_slice %97 {offsets = [0, 124], sizes = [24, 4], strides = [1, 1]} : vector<24x128xf32> to vector<24x4xf32>
    %99 = vector.extract_strided_slice %97 {offsets = [0, 0], sizes = [24, 124], strides = [1, 1]} : vector<24x128xf32> to vector<24x124xf32>
    %100 = tpu.concatenate %98, %99 in 1 : vector<24x4xf32>, vector<24x124xf32> -> vector<24x128xf32>
    %c4_i32 = arith.constant 4 : i32
    %101 = vector.broadcast %c4_i32 : i32 to vector<1x128xi32>
    %102 = arith.cmpi sge, %18, %101 : vector<1x128xi32>
    %cst_50 = arith.constant 0.000000e+00 : f32
    %103 = vector.broadcast %cst_50 : f32 to vector<24x128xf32>
    %104 = vector.shape_cast %102 : vector<1x128xi1> to vector<1x128xi1>
    %105 = vector.broadcast %104 : vector<1x128xi1> to vector<24x128xi1>
    %106 = arith.select %105, %100, %103 : vector<24x128xi1>, vector<24x128xf32>
    %c0_51 = arith.constant 0 : index
    %c0_52 = arith.constant 0 : index
    %c0_53 = arith.constant 0 : index
    %107 = vector.load %arg6[%c0_51, %c0_52, %c0_53] : memref<3x8x24xf32, #tpu.memory_space<vmem>>, vector<1x8x24xf32>
    %108 = vector.shape_cast %107 : vector<1x8x24xf32> to vector<8x24xf32>
    %cst_54 = arith.constant dense<0.000000e+00> : vector<8x128xf32>
    %109 = tpu.matmul %108, %106, %cst_54 {dimension_numbers = #tpu.dot_dimension_numbers<[1], [0], [0], [1], [0, 0, 1, 1], [], []>} : vector<8x24xf32>, vector<24x128xf32>, vector<8x128xf32> -> vector<8x128xf32>
    %c1_55 = arith.constant 1 : index
    %c0_56 = arith.constant 0 : index
    %c0_57 = arith.constant 0 : index
    %110 = vector.load %arg6[%c1_55, %c0_56, %c0_57] : memref<3x8x24xf32, #tpu.memory_space<vmem>>, vector<1x8x24xf32>
    %111 = vector.shape_cast %110 : vector<1x8x24xf32> to vector<8x24xf32>
    %cst_58 = arith.constant dense<0.000000e+00> : vector<8x128xf32>
    %112 = tpu.matmul %111, %97, %cst_58 {dimension_numbers = #tpu.dot_dimension_numbers<[1], [0], [0], [1], [0, 0, 1, 1], [], []>} : vector<8x24xf32>, vector<24x128xf32>, vector<8x128xf32> -> vector<8x128xf32>
    %113 = arith.addf %109, %112 : vector<8x128xf32>
    %114 = vector.extract_strided_slice %97 {offsets = [0, 4], sizes = [24, 124], strides = [1, 1]} : vector<24x128xf32> to vector<24x124xf32>
    %115 = vector.extract_strided_slice %97 {offsets = [0, 0], sizes = [24, 4], strides = [1, 1]} : vector<24x128xf32> to vector<24x4xf32>
    %116 = tpu.concatenate %114, %115 in 1 : vector<24x124xf32>, vector<24x4xf32> -> vector<24x128xf32>
    %c124_i32 = arith.constant 124 : i32
    %117 = vector.broadcast %c124_i32 : i32 to vector<1x128xi32>
    %118 = arith.cmpi slt, %18, %117 : vector<1x128xi32>
    %cst_59 = arith.constant 0.000000e+00 : f32
    %119 = vector.broadcast %cst_59 : f32 to vector<24x128xf32>
    %120 = vector.shape_cast %118 : vector<1x128xi1> to vector<1x128xi1>
    %121 = vector.broadcast %120 : vector<1x128xi1> to vector<24x128xi1>
    %122 = arith.select %121, %116, %119 : vector<24x128xi1>, vector<24x128xf32>
    %c2_60 = arith.constant 2 : index
    %c0_61 = arith.constant 0 : index
    %c0_62 = arith.constant 0 : index
    %123 = vector.load %arg6[%c2_60, %c0_61, %c0_62] : memref<3x8x24xf32, #tpu.memory_space<vmem>>, vector<1x8x24xf32>
    %124 = vector.shape_cast %123 : vector<1x8x24xf32> to vector<8x24xf32>
    %cst_63 = arith.constant dense<0.000000e+00> : vector<8x128xf32>
    %125 = tpu.matmul %124, %122, %cst_63 {dimension_numbers = #tpu.dot_dimension_numbers<[1], [0], [0], [1], [0, 0, 1, 1], [], []>} : vector<8x24xf32>, vector<24x128xf32>, vector<8x128xf32> -> vector<8x128xf32>
    %126 = arith.addf %113, %125 : vector<8x128xf32>
    %c24 = arith.constant 24 : index
    %c0_64 = arith.constant 0 : index
    %127 = vector.load %arg9[%c24, %c0_64] : memref<32x128xf32, #tpu.memory_space<vmem>>, vector<8x128xf32>
    tpu.vector_store %arg9[%c24, %c0_64], %126 {strides = array<i32>} : memref<32x128xf32, #tpu.memory_space<vmem>>, vector<8x128xf32>,
    return
  }
  func.func @transform_0(%arg0: i32) -> (i32, i32) {
    %c0_i32 = arith.constant 0 : i32
    %c0_i32_0 = arith.constant 0 : i32
    return %c0_i32, %arg0 : i32, i32
  }
  func.func @transform_1(%arg0: i32) -> (i32, i32, i32) {
    %c0_i32 = arith.constant 0 : i32
    %c0_i32_0 = arith.constant 0 : i32
    %c0_i32_1 = arith.constant 0 : i32
    %c0_i32_2 = arith.constant 0 : i32
    return %c0_i32, %c0_i32_0, %c0_i32_1 : i32, i32, i32
  }
  func.func @transform_2(%arg0: i32) -> (i32, i32, i32) {
    %c0_i32 = arith.constant 0 : i32
    %c0_i32_0 = arith.constant 0 : i32
    %c0_i32_1 = arith.constant 0 : i32
    %c0_i32_2 = arith.constant 0 : i32
    return %c0_i32, %c0_i32_0, %c0_i32_1 : i32, i32, i32
  }
  func.func @transform_3(%arg0: i32) -> (i32, i32) {
    %c0_i32 = arith.constant 0 : i32
    %c0_i32_0 = arith.constant 0 : i32
    %c0_i32_1 = arith.constant 0 : i32
    return %c0_i32, %c0_i32_0 : i32, i32
  }
  func.func @transform_4(%arg0: i32) -> (i32, i32) {
    %c0_i32 = arith.constant 0 : i32
    %c0_i32_0 = arith.constant 0 : i32
    %c0_i32_1 = arith.constant 0 : i32
    return %c0_i32, %c0_i32_0 : i32, i32
  }
  func.func @transform_5(%arg0: i32) -> (i32, i32, i32) {
    %c0_i32 = arith.constant 0 : i32
    %c0_i32_0 = arith.constant 0 : i32
    %c0_i32_1 = arith.constant 0 : i32
    %c0_i32_2 = arith.constant 0 : i32
    return %c0_i32, %c0_i32_0, %c0_i32_1 : i32, i32, i32
  }
  func.func @transform_6(%arg0: i32) -> (i32, i32) {
    %c0_i32 = arith.constant 0 : i32
    %c0_i32_0 = arith.constant 0 : i32
    %c0_i32_1 = arith.constant 0 : i32
    return %c0_i32, %c0_i32_0 : i32, i32
  }
  func.func @transform_7(%arg0: i32) -> (i32, i32) {
    %c0_i32 = arith.constant 0 : i32
    %c0_i32_0 = arith.constant 0 : i32
    %c0_i32_1 = arith.constant 0 : i32
    return %c0_i32, %c0_i32_0 : i32, i32
  }
  func.func @transform_8(%arg0: i32) -> (i32, i32) {
    %c0_i32 = arith.constant 0 : i32
    %c0_i32_0 = arith.constant 0 : i32
    return %c0_i32, %arg0 : i32, i32
  }
}

</mosaic_0001>

<bundles_post_ra>
// kernel: _lambda_.1
= control target key start
LH: loop header
LB: loop body
LE: loop exit
PB: predicated region body
PF: predicated region fallthrough
CT: control target
= control target key end

     0   :  { %13 = vsyncpa [#allocation3], 0  ;;  %s2123_s0 = inlined_call_operand.vmem [shape: f32[8,256], index: 0, kind: input, shape index: {}]   ;;  %s2124_s1 = inlined_call_operand.vmem [shape: f32[3,8,8], index: 1, kind: input, shape index: {}]   ;;  %s2125_s2 = inlined_call_operand.hbm [shape: f32[3,8,16], index: 2, kind: input, shape index: {}]   ;;  %s2126_s3 = inlined_call_operand.hbm [shape: f32[16,1], index: 3, kind: input, shape index: {}]   ;;  %s2127_s4 = inlined_call_operand.hbm [shape: f32[16,1], index: 4, kind: input, shape index: {}]   ;;  %s2128_s5 = inlined_call_operand.hbm [shape: f32[3,8,24], index: 5, kind: input, shape index: {}]   ;;  %s2129_s6 = inlined_call_operand.hbm [shape: f32[24,1], index: 6, kind: input, shape index: {}]   ;;  %s2130_s7 = inlined_call_operand.hbm [shape: f32[24,1], index: 7, kind: input, shape index: {}]   ;;  %s2131_s8 = inlined_call_operand.vmem [shape: f32[32,256], index: 8, kind: output, shape index: {}]  }
   0x1   :  { %14 = vsyncpa [#allocation5], 0 }
   0x2   :  { %15 = vsyncpa [#allocation8], 0 }
   0x3   :  { %16 = vsyncpa [#allocation11], 0  ;;  %s1891_s27 = smov 0   ;;  %s1893_s28 = smov 0  }
   0x4   :  { %s1895_s29 = smov 0  }
   0x5 LB: > { %s1904_s30 = sadd.s32 4294967295, %s1827_s29   ;;  %s1906_s9 = sadd.s32 1, %s1827_s29   ;;  %s1827_s29 = sphi %s1895_s29, %s2138_s29   ;;  %s1823_s28 = sphi %s1893_s28, %s2137_s28   ;;  %s1819_s27 = sphi %s1891_s27, %s2136_s27  }
   0x6   : > { %s199_s10 = ssub.s32 %s1827_s29, %s1906_s9  ;;  %s202_s11 = sadd.s32 1, %s1823_s28 }
   0x7   : > { %p200_p0 = scmp.eq.s32.totalorder %s199_s10, 0  ;;  %p212_p1 = scmp.ne.s32.totalorder %s1823_s28, %s1819_s27 }
   0x8   : > { %p213_p2 = scmp.eq.s32.totalorder %s1904_s30, 1  ;;  %p1401_p3 = scmp.ge.s32.totalorder %s1827_s29, 1 }
   0x9   : > { %s1914_s12 = scalar_select %p200_p0, %s1823_s28, %s202_s11  }
   0xa   : > { %p1916_p4 = por %p213_p2, %p212_p1  ;;  %p226_p5 = scmp.lt.s32.totalorder %s1827_s29, 3 }
   0xb   : > { %p1578_p6 = scmp.eq.s32.totalorder %s1904_s30, 0  ;;  %s1829_s15 = smov [#allocation4]  }
   0xc   : > { %p1921_p7 = pnand %p1401_p3, %p226_p5  ;;  %s254_s16 = sshll.u32 %s1829_s15, 4  ;;  %s255_s16 = int_to_ptr.vmem [resolvable:$true] %s254_s16 }
   0xd   : > { %s1830_s18 = smov [#allocation7]   ;;  %s1831_s20 = smov [#allocation2]  }
   0xe   : > { %p1559_p8 = pneg %p1921_p7  ;;  %s280_s19 = sshll.u32 %s1830_s18, 4  ;;  %s281_s19 = int_to_ptr.vmem [resolvable:$true] %s280_s19 }
   0xf   : > { %s241_s21 = sshll.u32 %s1831_s20, 4  ;;  %s1644_s23 = scalar_lea.vmem %s255_s16, 256  ;;  %s242_s21 = int_to_ptr.vmem [resolvable:$true] %s241_s21 }
  0x10   : > { %p1929_p9 = pnand %p1578_p6, %p1559_p8  ;;  %p1645_p11 = scmp.ne.s32.totalorder %s255_s16, %s1644_s23 }
  0x11   : > { %p1652_p0 = scmp.lt.s32.totalorder %s255_s16, %s255_s16  ;;  %p1653_p1 = scmp.lt.s32.totalorder %s1644_s23, %s1644_s23 }
  0x12   : > { %p1935_p10 = pneg %p1929_p9 }
  0x13   : > { %p1654_p2 = por %p1653_p1, %p1652_p0 }
  0x14   : > { %p1647_p12 = pnand %p1645_p11, %p1935_p10 }
  0x16   : > { %p1648_p13 = pneg %p1647_p12 }
  0x18   : > { %p1655_p3 = pnand %p1654_p2, %p1648_p13 }
  0x1a   : > { %1658 = shalt.err (!%p1655_p3)
}
  0x1b   : > { %s1832_s24 = smov 128   ;;  %s1833_s25 = smov 8  }
  0x1c   : > { %1565 = dma.hbm_to_vmem [thread:$0]  (!%p1929_p9), %s2126_s3, 256, %s255_s16, [#allocation5], %s1832_s24, %s1832_s24, %s1833_s25  }
  0x1d   : > { %s1670_s10 = scalar_lea.vmem %s281_s19, 384  ;;  %p1678_p12 = scmp.lt.s32.totalorder %s281_s19, %s281_s19 }
  0x1e   : > { %p1671_p5 = scmp.ne.s32.totalorder %s281_s19, %s1670_s10  ;;  %p1679_p13 = scmp.lt.s32.totalorder %s1670_s10, %s1670_s10 }
  0x20   : > { %p1673_p8 = pnand %p1671_p5, %p1935_p10  ;;  %p1680_p0 = por %p1679_p13, %p1678_p12 }
  0x22   : > { %p1674_p11 = pneg %p1673_p8 }
  0x24   : > { %p1681_p1 = pnand %p1680_p0, %p1674_p11 }
  0x26   : > { %1684 = shalt.err (!%p1681_p1)
}
  0x27   : > { %1571 = dma.hbm_to_vmem [thread:$0]  (!%p1929_p9), %s2128_s5, 384, %s281_s19, [#allocation8], %s1832_s24, %s1832_s24, %s1833_s25  }
  0x28   : > { %s1696_s16 = scalar_lea.vmem %s242_s21, 384  ;;  %p1704_p8 = scmp.lt.s32.totalorder %s242_s21, %s242_s21 }
  0x29   : > { %p1697_p2 = scmp.ne.s32.totalorder %s242_s21, %s1696_s16  ;;  %p1705_p12 = scmp.lt.s32.totalorder %s1696_s16, %s1696_s16 }
  0x2b   : > { %p1699_p3 = pnand %p1697_p2, %p1935_p10  ;;  %p1706_p11 = por %p1705_p12, %p1704_p8 }
  0x2d   : > { %p1700_p5 = pneg %p1699_p3 }
  0x2f   : > { %p1707_p13 = pnand %p1706_p11, %p1700_p5 }
  0x31   : > { %1710 = shalt.err (!%p1707_p13)
}
  0x32   : > { %1562 = dma.hbm_to_vmem [thread:$0]  (!%p1929_p9), %s2125_s2, 384, %s242_s21, [#allocation3], %s1832_s24, %s1832_s24, %s1833_s25  }
  0x33   : > { %s1834_s19 = smov [#allocation6]   ;;  %s1835_s26 = smov [#allocation9]  }
  0x34   : > { %s267_s23 = sshll.u32 %s1834_s19, 4  ;;  %s293_s29 = sshll.u32 %s1835_s26, 4  ;;  %s268_s23 = int_to_ptr.vmem [resolvable:$true] %s267_s23  ;;  %s294_s29 = int_to_ptr.vmem [resolvable:$true] %s293_s29 }
  0x35   : > { %s1722_s10 = scalar_lea.vmem %s268_s23, 256  ;;  %p1730_p3 = scmp.lt.s32.totalorder %s268_s23, %s268_s23 }
  0x36   : > { %p1723_p0 = scmp.ne.s32.totalorder %s268_s23, %s1722_s10  ;;  %p1731_p5 = scmp.lt.s32.totalorder %s1722_s10, %s1722_s10 }
  0x38   : > { %p1725_p1 = pnand %p1723_p0, %p1935_p10  ;;  %p1732_p8 = por %p1731_p5, %p1730_p3 }
  0x3a   : > { %p1726_p2 = pneg %p1725_p1 }
  0x3c   : > { %p1733_p12 = pnand %p1732_p8, %p1726_p2 }
  0x3e   : > { %1736 = shalt.err (!%p1733_p12)
}
  0x3f   : > { %1568 = dma.hbm_to_vmem [thread:$0]  (!%p1929_p9), %s2127_s4, 256, %s268_s23, [#allocation5], %s1832_s24, %s1832_s24, %s1833_s25  }
  0x40   : > { %s1748_s15 = scalar_lea.vmem %s294_s29, 384  ;;  %p1756_p1 = scmp.lt.s32.totalorder %s294_s29, %s294_s29 }
  0x41   : > { %p1749_p11 = scmp.ne.s32.totalorder %s294_s29, %s1748_s15  ;;  %p1757_p3 = scmp.lt.s32.totalorder %s1748_s15, %s1748_s15 }
  0x43   : > { %p1751_p13 = pnand %p1749_p11, %p1935_p10  ;;  %p1758_p2 = por %p1757_p3, %p1756_p1 }
  0x45   : > { %p1752_p0 = pneg %p1751_p13 }
  0x47   : > { %p1759_p5 = pnand %p1758_p2, %p1752_p0 }
  0x49   : > { %1762 = shalt.err (!%p1759_p5)
}
  0x4a   : > { %1574 = dma.hbm_to_vmem [thread:$0]  (!%p1929_p9), %s2129_s6, 384, %s294_s29, [#allocation8], %s1832_s24, %s1832_s24, %s1833_s25  }
  0x4b   : > { %s1836_s20 = smov [#allocation10]  }
  0x4c   : > { %s306_s19 = sshll.u32 %s1836_s20, 4  ;;  %s307_s19 = int_to_ptr.vmem [resolvable:$true] %s306_s19 }
  0x4d   : > { %s1774_s23 = scalar_lea.vmem %s307_s19, 384  ;;  %p1782_p13 = scmp.lt.s32.totalorder %s307_s19, %s307_s19 }
  0x4e   : > { %p1775_p8 = scmp.ne.s32.totalorder %s307_s19, %s1774_s23  ;;  %p1783_p0 = scmp.lt.s32.totalorder %s1774_s23, %s1774_s23 }
  0x50   : > { %p1777_p12 = pnand %p1775_p8, %p1935_p10  ;;  %p1784_p1 = por %p1783_p0, %p1782_p13 }
  0x52   : > { %p1778_p11 = pneg %p1777_p12 }
  0x54   : > { %p1785_p3 = pnand %p1784_p1, %p1778_p11 }
  0x56   : > { %1788 = shalt.err (!%p1785_p3)
}
  0x57   : > { %1577 = dma.hbm_to_vmem [thread:$0]  (!%p1929_p9), %s2130_s7, 384, %s307_s19, [#allocation11], %s1832_s24, %s1832_s24, %s1833_s25  }
  0x58   : > { %329 = sbr.rel (%p1921_p7) target bundleno = 1081 (0x439), region = 52 }
  0x5d   : > { %1802 = dma.done.wait (%p1578_p6), [#allocation3], 384  }
  0x5e   : > { %1804 = vsyncadd (%p1578_p6), [#allocation3], 4294966912 }
  0x5f   : > { %1806 = dma.done.wait (%p1578_p6), [#allocation5], 512  }
  0x60   : > { %1808 = vsyncadd (%p1578_p6), [#allocation5], 4294966784 }
  0x61   : > { %1810 = dma.done.wait (%p1578_p6), [#allocation8], 768  }
  0x62   : > { %1812 = vsyncadd (%p1578_p6), [#allocation8], 4294966528 }
  0x63   : > { %1814 = dma.done.wait (%p1578_p6), [#allocation11], 384  }
  0x64   : > { %1816 = vsyncadd (%p1578_p6), [#allocation11], 4294966912  ;;  %p381_p7 = scmp.lt.s32.totalorder %s1904_s30, 1  ;;  %s378_s14 = sand.u32 1, %s1819_s27   ;;  %v1837_v0 = vmov 0   ;;  %v1838_v1 = vmov 0.0   ;;  %v387_v8 = vlaneseq }
  0x65   : > { %1631 = vset.pattern.permute.xlu1 %v1837_v0  ;;  %1472 = vmatprep.subr.mxu1 %v1838_v1  ;;  %vm1839_vm0 = vmmov 0   ;;  %s1416_s22 = sshll.u32 %s378_s14, 5  ;;  %v647_v3 = vld [vmem:[#allocation4 + $0x8] sm:$0xff]  ;;  %vm413_vm1 = vcmask 64512   ;;  %s1840_s11 = smov 1   ;;  %v1418_v4 = vld [vmem:[%s2124_s1 + $0x8] sm:$0xff] }
  0x66   : > { %1474 = vmatprep.mubr.msk.f32.mxu1 %vm1839_vm0, %v1838_v1  ;;  %1482 = vmatprep.subr.mxu0 %v1838_v1  ;;  %s382_s17 = scalar_select %p381_p7, %s1904_s30, 1  ;;  %v646_v5 = vld [vmem:[#allocation4] sm:$0xff]  ;;  %v660_v6 = vld [vmem:[#allocation6] sm:$0xff]  ;;  %v661_v7 = vld [vmem:[#allocation6 + $0x8] sm:$0xff]  ;;  %v2039_v9 = vand.u32 127, %v387_v8  ;;  %vm692_vm4 = vcmask 130048  }
  0x67   : > { %1484 = vmatprep.mubr.msk.f32.mxu0 %vm1839_vm0, %v1838_v1  ;;  %1632 = vset.pattern.permute.xlu0 %v1837_v0  ;;  %s2029_s21 = scalar_lea.vmem [#allocation12], %s1416_s22  ;;  %s1841_s18 = smov 127   ;;  %v410_v10 = vld [vmem:[%s2124_s1] sm:$0xff]  ;;  %v1422_v12 = vld [vmem:[%s2124_s1 + $0x10] sm:$0xff]  ;;  %v930_v21 = vld [vmem:[#allocation9] sm:$0xff]  ;;  %vm996_vm7 = vcmask 195584  }
  0x68   : > { %s1417_s24 = sshll.u32 %s382_s17, 3  ;;  %655 = vperm.xlu1 %1631, %v647_v3   ;;  %vm406_vm2 = vcmp.ge.s32.totalorder %v2039_v9, 1  ;;  %vm563_vm3 = vcmp.lt.s32.totalorder %v2039_v9, 127  ;;  %s1842_s29 = smov 2   ;;  %v931_v20 = vld [vmem:[#allocation9 + $0x8] sm:$0xff]  ;;  %v951_v22 = vld [vmem:[#allocation10] sm:$0xff] }
  0x69   : > { %s384_s10 = scalar_lea.vmem %s2123_s0, %s1417_s24  ;;  %s1843_s14 = smov 126   ;;  %v691_v44 = vld [vmem:[#allocation2 + $0x8] sm:$0xff]  ;;  %v932_v45 = vld [vmem:[#allocation9 + $0x10] sm:$0xff]  ;;  %v953_v46 = vld [vmem:[#allocation10 + $0x10] sm:$0xff]  ;;  %vm684_vm5 = vcmp.ge.s32.totalorder %v2039_v9, 2  ;;  %vm845_vm6 = vcmp.lt.s32.totalorder %v2039_v9, 126 }
  0x6a   : > { %v385_v2 = vld [vmem:[%s384_s10] sm:$0xff]  ;;  %s1844_s17 = smov 4   ;;  %v952_v47 = vld [vmem:[#allocation10 + $0x8] sm:$0xff]  ;;  %v689_v49 = vld [vmem:[#allocation2] sm:$0xff]  ;;  %s1845_s22 = smov 124   ;;  %vm987_vm8 = vcmp.ge.s32.totalorder %v2039_v9, 4 }
  0x6b   : > { %386 = vst [vmem:[%s2029_s21] sm:$0xff] %v385_v2  ;;  %403 = vrot.lane.b32.xlu0 %v385_v2, %s1840_s11  ;;  %1473 = vmatpush3.msra.mxu1 %v385_v2  ;;  %v851_v51 = vld [vmem:[#allocation2 + $0x10] sm:$0xff]  ;;  %vm1152_vm9 = vcmp.lt.s32.totalorder %v2039_v9, 124  ;;  %s1442_s24 = sshll.u32 (%p1916_p4), %s1904_s30, 3 }
  0x6c   : > { %1475 = vmatmul.mubr.msk.f32.vlgmr.msra.gmra.mxu1 %vm413_vm1, %v1418_v4  ;;  %1477 = vmatprep.subr.mxu1 %v1838_v1  ;;  %s1243_s10 = scalar_lea.vmem (%p1916_p4), %s2131_s8, %s1442_s24 }
  0x6d   : > { %1479 = vmatprep.mubr.msk.f32.mxu1 %vm1839_vm0, %v1838_v1  ;;  %650 = vperm.xlu1 %1631, %v646_v5   ;;  %v995_v5 = vld [vmem:[#allocation7 + $0x8] sm:$0xff] }
  0x6f   : > { %560 = vrot.lane.b32.xlu0 %v385_v2, %s1841_s18 }
  0x71   : > { %664 = vperm.xlu1 %1631, %v660_v6  }
  0x73   : > { %669 = vperm.xlu0 %1632, %v661_v7  }
  0xdd   : > { %v404_v11 = vpop.permute.xlu0 %403 }
  0xde   : > { %1478 = vmatpush3.msk.msra.mxu1 %vm406_vm2, %v404_v11 }
  0xdf   : > { %1480 = vmatmul.mubr.msk.f32.vlgmr.msra.gmra.mxu1 %vm413_vm1, %v410_v10  ;;  %1487 = vmatprep.subr.mxu1 %v1838_v1  ;;  %v993_v10 = vld [vmem:[#allocation7] sm:$0xff] }
  0xe0   : > { %1491 = vmatprep.mubr.msk.f32.mxu1 %vm1839_vm0, %v1838_v1 }
  0xe1   : > { %v561_v13 = vpop.permute.xlu0 %560 }
  0xe2   : > { %1483 = vmatpush3.msk.msra.mxu0 %vm563_vm3, %v561_v13  ;;  %v1159_v13 = vld [vmem:[#allocation7 + $0x10] sm:$0xff] }
  0xe3   : > { %1485 = vmatmul.mubr.msk.f32.vlgmr.msra.gmra.mxu0 %vm413_vm1, %v1422_v12  ;;  %1494 = vmatprep.subr.mxu0 %v1838_v1  ;;  %v656_v14 = vpop.permute.xlu1 %655 }
  0xe4   : > { %1498 = vmatprep.mubr.msk.f32.mxu0 %vm1839_vm0, %v1838_v1 }
  0xe8   : > { %v651_v15 = vpop.permute.xlu1 %650 }
  0xe9   : > { %v658_v16 = vmul.f32 %v651_v15, %v385_v2 }
  0xec   : > { %v665_v17 = vpop.permute.xlu1 %664 }
  0xed   : > { %v672_v18 = vadd.f32 %v665_v17, %v658_v16 }
  0xee   : > { %v670_v25 = vpop.permute.xlu0 %669 }
  0xef   : > { %v674_v19 = vmax.f32 %v672_v18, 0.0 }
  0xf1   : > { %678 = vrot.lane.b32.xlu0 %v674_v19, %s1842_s29 }
  0xf5   : > { %839 = vrot.lane.b32.xlu0 %v674_v19, %s1843_s14 }
  0xf9   : > { %940 = vperm.xlu0 %1632, %v931_v20  }
  0xfd   : > { %935 = vperm.xlu0 %1632, %v930_v21  }
 0x101   : > { %956 = vperm.xlu0 %1632, %v951_v22  }
 0x12c   : > { %v483_v23 = vpop.f32.mrf.mxu1 }
 0x12e   : > { %v1476_v24 = vpop.f32.mrf.mxu1 }
 0x163   : > { %v679_v26 = vpop.permute.xlu0 %678 }
 0x167   : > { %v840_v27 = vpop.permute.xlu0 %839 }
 0x174   : > { %v941_v28 = vpop.permute.xlu0 %940 }
 0x178   : > { %v936_v29 = vpop.permute.xlu0 %935 }
 0x179   : > { %v948_v30 = vmul.f32 %v936_v29, %v385_v2 }
 0x17c   : > { %v957_v31 = vpop.permute.xlu0 %956 }
 0x17d   : > { %v969_v32 = vadd.f32 %v957_v31, %v948_v30 }
 0x17f   : > { %v2059_v33 = vmax.f32 %v969_v32, 0.0 }
 0x181   : > { %978 = vrot.lane.b32.xlu0 %v2059_v33, %s1844_s17 }
 0x19f   : > { %v556_v34 = vpop.f32.mrf.mxu1 }
 0x1a0   : > { %v557_v36 = vadd.f32 %v556_v34, %v483_v23 }
 0x1a1   : > { %v1481_v35 = vpop.f32.mrf.mxu1 }
 0x1a3   : > { %v638_v37 = vpop.f32.mrf.mxu0 }
 0x1a4   : > { %v642_v38 = vadd.f32 %v638_v37, %v557_v36 }
 0x1a5   : > { %v1486_v39 = vpop.f32.mrf.mxu0 }
 0x1a6   : > { %643 = vst [vmem:[%s2029_s21 + $0x8] sm:$0xff] %v642_v38  ;;  %v949_v40 = vmul.f32 %v941_v28, %v642_v38  ;;  %v659_v41 = vmul.f32 %v656_v14, %v642_v38 }
 0x1a8   : > { %v673_v42 = vadd.f32 %v670_v25, %v659_v41 }
 0x1aa   : > { %v675_v43 = vmax.f32 %v673_v42, 0.0 }
 0x1ac   : > { %680 = vrot.lane.b32.xlu1 %v675_v43, %s1842_s29  ;;  %1488 = vmatpush3.msra.mxu1 %v675_v43 }
 0x1ad   : > { %1489 = vmatprep.subr.mxu1 %v1838_v1  ;;  %v1280_v22 = vld [vmem:[%s2029_s21 + $0x8] sm:$0xff] (%p1916_p4) }
 0x1ae   : > { %1490 = vmatpush3.msra.mxu1 %v674_v19  ;;  %1281 = vst [vmem:[%s1243_s10 + $0x10] sm:$0xff] (%p1916_p4), %v1280_v22 }
 0x1af   : > { %1492 = vmatmul.mubr.msk.f32.vlgmr.msra.gmra.mxu1 %vm692_vm4, %v691_v44  ;;  %1501 = vmatprep.subr.mxu1 %v1838_v1 }
 0x1b0   : > { %841 = vrot.lane.b32.xlu1 %v675_v43, %s1843_s14  ;;  %1505 = vmatprep.mubr.msk.f32.mxu1 %vm1839_vm0, %v1838_v1 }
 0x1b4   : > { %945 = vperm.xlu1 %1631, %v932_v45  }
 0x1b8   : > { %966 = vperm.xlu1 %1631, %v953_v46  }
 0x1bc   : > { %961 = vperm.xlu1 %1631, %v952_v47  }
 0x1f3   : > { %v979_v6 = vpop.permute.xlu0 %978 }
 0x21e   : > { %v681_v48 = vpop.permute.xlu1 %680 }
 0x21f   : > { %1495 = vmatpush3.msk.msra.mxu0 %vm684_vm5, %v681_v48 }
 0x220   : > { %1496 = vmatprep.subr.mxu0 %v1838_v1 }
 0x221   : > { %1497 = vmatpush3.msk.msra.mxu0 %vm684_vm5, %v679_v26 }
 0x222   : > { %v842_v50 = vpop.permute.xlu1 %841  ;;  %1499 = vmatmul.mubr.msk.f32.vlgmr.msra.gmra.mxu0 %vm692_vm4, %v689_v49  ;;  %1508 = vmatprep.subr.mxu0 %v1838_v1 }
 0x223   : > { %1502 = vmatpush3.msk.msra.mxu1 %vm845_vm6, %v842_v50  ;;  %1514 = vmatprep.mubr.msk.f32.mxu0 %vm1839_vm0, %v1838_v1 }
 0x224   : > { %1503 = vmatprep.subr.mxu1 %v1838_v1 }
 0x225   : > { %1504 = vmatpush3.msk.msra.mxu1 %vm845_vm6, %v840_v27 }
 0x226   : > { %1506 = vmatmul.mubr.msk.f32.vlgmr.msra.gmra.mxu1 %vm692_vm4, %v851_v51  ;;  %1517 = vmatprep.subr.mxu1 %v1838_v1 }
 0x227   : > { %1523 = vmatprep.mubr.msk.f32.mxu1 %vm1839_vm0, %v1838_v1 }
 0x22f   : > { %v946_v52 = vpop.permute.xlu1 %945 }
 0x233   : > { %v967_v53 = vpop.permute.xlu1 %966 }
 0x237   : > { %v962_v54 = vpop.permute.xlu1 %961 }
 0x238   : > { %v970_v55 = vadd.f32 %v962_v54, %v949_v40 }
 0x23a   : > { %v973_v56 = vmax.f32 %v970_v55, 0.0 }
 0x23c   : > { %980 = vrot.lane.b32.xlu0 %v973_v56, %s1844_s17 }
 0x240   : > { %1143 = vrot.lane.b32.xlu0 %v2059_v33, %s1845_s22 }
 0x26f   : > { %v762_v57 = vpop.f32.mrf.mxu1 }
 0x271   : > { %v1493_v58 = vpop.f32.mrf.mxu1 }
 0x2ae   : > { %v981_v8 = vpop.permute.xlu0 %980 }
 0x2b2   : > { %v1144_v14 = vpop.permute.xlu0 %1143 }
 0x2e2   : > { %v835_v59 = vpop.f32.mrf.mxu0 }
 0x2e3   : > { %v836_v61 = vadd.f32 %v835_v59, %v762_v57 }
 0x2e4   : > { %v1500_v60 = vpop.f32.mrf.mxu0 }
 0x2e6   : > { %v921_v62 = vpop.f32.mrf.mxu1 }
 0x2e7   : > { %v925_v63 = vadd.f32 %v921_v62, %v836_v61 }
 0x2e8   : > { %v1507_v0 = vpop.f32.mrf.mxu1 }
 0x2e9   : > { %926 = vst [vmem:[%s2029_s21 + $0x10] sm:$0xff] %v925_v63  ;;  %v950_v2 = vmul.f32 %v946_v52, %v925_v63 }
 0x2eb   : > { %v971_v3 = vadd.f32 %v967_v53, %v950_v2 }
 0x2ed   : > { %v974_v4 = vmax.f32 %v971_v3, 0.0 }
 0x2ef   : > { %982 = vrot.lane.b32.xlu1 %v974_v4, %s1844_s17  ;;  %1509 = vmatpush3.msra.mxu0 %v974_v4 }
 0x2f0   : > { %1510 = vmatprep.subr.mxu0 %v1838_v1  ;;  %v1282_v23 = vld [vmem:[%s2029_s21 + $0x10] sm:$0xff] (%p1916_p4) }
 0x2f1   : > { %1511 = vmatpush3.msra.mxu0 %v973_v56  ;;  %1283 = vst [vmem:[%s1243_s10 + $0x20] sm:$0xff] (%p1916_p4), %v1282_v23 }
 0x2f2   : > { %1512 = vmatprep.subr.mxu0 %v1838_v1 }
 0x2f3   : > { %1147 = vrot.lane.b32.xlu1 %v974_v4, %s1845_s22  ;;  %1513 = vmatpush3.msra.mxu0 %v2059_v33 }
 0x2f4   : > { %1526 = vmatprep.subr.mxu0 %v1838_v1  ;;  %1515 = vmatmul.mubr.msk.f32.vlgmr.msra.gmra.mxu0 %vm996_vm7, %v995_v5 }
 0x2f5   : > { %1532 = vmatprep.mubr.msk.f32.mxu0 %vm1839_vm0, %v1838_v1 }
 0x2f7   : > { %1145 = vrot.lane.b32.xlu1 %v973_v56, %s1845_s22 }
 0x361   : > { %v983_v7 = vpop.permute.xlu1 %982 }
 0x362   : > { %1518 = vmatpush3.msk.msra.mxu1 %vm987_vm8, %v983_v7 }
 0x363   : > { %1519 = vmatprep.subr.mxu1 %v1838_v1 }
 0x364   : > { %1520 = vmatpush3.msk.msra.mxu1 %vm987_vm8, %v981_v8 }
 0x365   : > { %1521 = vmatprep.subr.mxu1 %v1838_v1  ;;  %v1148_v11 = vpop.permute.xlu1 %1147 }
 0x366   : > { %1522 = vmatpush3.msk.msra.mxu1 %vm987_vm8, %v979_v6  ;;  %1527 = vmatpush3.msk.msra.mxu0 %vm1152_vm9, %v1148_v11 }
 0x367   : > { %1524 = vmatmul.mubr.msk.f32.vlgmr.msra.gmra.mxu1 %vm996_vm7, %v993_v10  ;;  %1528 = vmatprep.subr.mxu0 %v1838_v1 }
 0x369   : > { %v1146_v12 = vpop.permute.xlu1 %1145 }
 0x36a   : > { %1529 = vmatpush3.msk.msra.mxu0 %vm1152_vm9, %v1146_v12 }
 0x36b   : > { %1530 = vmatprep.subr.mxu0 %v1838_v1  ;;  %v1278_v1 = vld [vmem:[%s2029_s21] sm:$0xff] (%p1916_p4) }
 0x36c   : > { %1531 = vmatpush3.msk.msra.mxu0 %vm1152_vm9, %v1144_v14  ;;  %1279 = vst [vmem:[%s1243_s10] sm:$0xff] (%p1916_p4), %v1278_v1 }
 0x36d   : > { %1533 = vmatmul.mubr.msk.f32.vlgmr.msra.gmra.mxu0 %vm996_vm7, %v1159_v13 }
 0x3b4   : > { %v1066_v9 = vpop.f32.mrf.mxu0 }
 0x3b6   : > { %v1516_v15 = vpop.f32.mrf.mxu0 }
 0x427   : > { %v1139_v16 = vpop.f32.mrf.mxu1 }
 0x428   : > { %v1140_v18 = vadd.f32 %v1139_v16, %v1066_v9 }
 0x429   : > { %v1525_v17 = vpop.f32.mrf.mxu1 }
 0x42c   : > { %1241 = sbr.rel (!%p1916_p4) target bundleno = 1081 (0x439), region = 80 }
 0x42d   : > { %v1229_v19 = vpop.f32.mrf.mxu0 }
 0x42e   : > { %v1233_v20 = vadd.f32 %v1229_v19, %v1140_v18 }
 0x42f   : > { %v1534_v21 = vpop.f32.mrf.mxu0 }
 0x430   : > { %1234 = vst [vmem:[%s2029_s21 + $0x18] sm:$0xff] %v1233_v20 }
 0x437   : > { %v1284_v24 = vld [vmem:[%s2029_s21 + $0x18] sm:$0xff] }
 0x438   : > { %1285 = vst [vmem:[%s1243_s10 + $0x30] sm:$0xff] %v1284_v24 }
 0x439 PF: > { %p19_p4 = scmp.ge.s32.totalorder %s1906_s9, 4   ;;  %s2136_s27 = smov %s1823_s28 }
 0x43a   : > { %s2137_s28 = smov %s1914_s12  ;;  %s2138_s29 = smov %s1906_s9 }
 0x43b   :  { %21 = sbr.rel (!%p19_p4) target bundleno = 5 (0x5), region = 151 }
 0x440   :  { %1301 = vsyncpa [#allocation3], 1 }
 0x441   :  { %1303 = vsyncpa [#allocation3 + $0x1], 1 }
 0x442   :  { %1304 = vsyncpa [#allocation5], 1 }
 0x443   :  { %1305 = vsyncpa [#allocation8], 1 }
 0x444   :  { %1306 = vsyncpa [#allocation11], 1 }

</bundles_post_ra>
